<compile_context>
chip_gen: v6e
topology: v6e:2x2x1
jax: 0.10.0
libtpu: 0.0.40
codegen_flags: <defaults>
</compile_context>

<pallas_src>
import math

import jax
import jax.numpy as jnp
from jax.experimental import pallas as pl
from jax.experimental.pallas import tpu as pltpu


# ------------------------- synthetic hyper-parameters -------------------------
B = 2            # batch
N_NODE = 8       # number of graph nodes (intersections)
NODE_FEAT = 12   # node_size (static config; also mirrored in x[:, -1, 0, 0])
EDGE_FEAT = 6    # edge_size (static config; also mirrored in x[:, -1, 0, 1])
PE_DIM = 8       # positional-encoding width
N_HEAD = 2       # config['N_HEAD']
N_DIM = 32       # config['N_DIM'] (latent_dim)
N_LAYER = 2      # number of mhgat (EGT) layers
ACT_SPACE = 4
USE_PPO = True


# --------------------------------- kernel -------------------------------------
def colight_kernel(tgt_ref, we_ref, be_ref,                      # SMEM
                   node_pe_ref, edge_obs_ref,                    # VMEM inputs
                   w_embed_ref, b_embed_ref,
                   wqkv_ref, wo_ref, bo_ref,
                   wac_ref, bac_ref,
                   out_ref):                                     # output [1, A+1]
    n = node_pe_ref.shape[0]
    d = w_embed_ref.shape[1]
    n_layer = wqkv_ref.shape[0]
    n_head = we_ref.shape[1]
    hd = d // n_head
    e_feat = edge_obs_ref.shape[0]
    a = wac_ref.shape[1] - 1                      # action-space width
    scale = 1.0 / math.sqrt(hd)
    b = pl.program_id(0)

    # ----- fused node + positional-encoding embedding (single matmul) -----
    node = (jnp.dot(node_pe_ref[...], w_embed_ref[...],
                    preferred_element_type=jnp.float32) + b_embed_ref[...])   # [N, D]

    # ----- edge embedding, head-major: python list of [N, N] tiles -----
    eo = edge_obs_ref[...]                                                    # [E, N, N]
    edges = []
    for h in range(n_head):
        acc = eo[0] * we_ref[0, h]
        for e in range(1, e_feat):
            acc = acc + eo[e] * we_ref[e, h]
        edges.append(acc + be_ref[0, h])                                      # [N, N]

    # ----- EGT-style multi-head graph attention layers -----
    for l in range(n_layer):
        # fused q|k|v projection for all heads: one [N, D] x [D, 3D] matmul
        qkv = jnp.dot(node, wqkv_ref[l], preferred_element_type=jnp.float32)  # [N, 3D]
        new_edges = []
        pvs = []
        for h in range(n_head):
            qh = qkv[:, h * hd:(h + 1) * hd]                                  # [N, hd]
            kh = qkv[:, d + h * hd:d + (h + 1) * hd]
            vh = qkv[:, 2 * d + h * hd:2 * d + (h + 1) * hd]
            s = jnp.dot(qh, kh.T, preferred_element_type=jnp.float32) * scale # [N, N]
            s = s + edges[h]                                                  # edge bias
            new_edges.append(edges[h] + s)                                    # edge update
            m = jnp.max(s, axis=-1, keepdims=True)
            p = jnp.exp(s - m)
            p = p * pl.reciprocal(jnp.sum(p, axis=-1, keepdims=True), approx=True)
            pvs.append(jnp.dot(p, vh, preferred_element_type=jnp.float32))    # [N, hd]
        # fused output projection: lane-concat heads, one [N, D] x [D, D] matmul
        pv_cat = jnp.concatenate(pvs, axis=-1)                                # [N, D]
        attn = jnp.dot(pv_cat, wo_ref[l], preferred_element_type=jnp.float32) # [N, D]
        node = node + attn + bo_ref[l]
        edges = new_edges

    # ----- gather target node: iota-mask select + sublane reduce (no scratch) -----
    t = tgt_ref[b]
    mask = jax.lax.broadcasted_iota(jnp.int32, (n, 1), 0) == t
    g = jnp.sum(jnp.where(mask, node, 0.0), axis=0, keepdims=True)            # [1, D]

    # ----- fused action (softmax probs) + critic head: single matmul/store -----
    out = (jnp.dot(g, wac_ref[...],
                   preferred_element_type=jnp.float32) + bac_ref[...])        # [1, A+1]
    logits = out[:, :a]
    lmax = jnp.max(logits, axis=-1, keepdims=True)
    ex = jnp.exp(logits - lmax)
    probs = ex * pl.reciprocal(jnp.sum(ex, axis=-1, keepdims=True), approx=True)
    out_ref[...] = jnp.concatenate([probs, out[:, a:]], axis=-1)              # [1, A+1]


# --------------------------------- wrapper -------------------------------------
@jax.jit
def colight_forward(x, position_encodings, params):
    b = x.shape[0]
    n = x.shape[2]
    # node_size / edge_size are static config constants (avoids the
    # device->host sync the reference int(x[...]) would force).
    tgt = jnp.clip(x[:, -1, 0, 2].astype(jnp.int32), 0, n - 1)                # [B]
    node_obs = x[:, 0, :, :NODE_FEAT].astype(jnp.float32)                     # [B, N, nf]
    edge_obs = x[:, 1:-1, :, :EDGE_FEAT].astype(jnp.float32)                  # [B, N, N, ef]
    edge_obs_t = jnp.transpose(edge_obs, (0, 3, 1, 2))                        # [B, ef, N, N]
    pe = position_encodings.reshape(position_encodings.shape[0], -1)
    pe = pe.astype(jnp.float32)                                               # [N, pd]

    d = params['wn'].shape[1]
    nf = params['wn'].shape[0]
    pd = params['wpe'].shape[0]
    n_layer = params['wq'].shape[0]
    a = params['wa'].shape[1]
    ef = params['we'].shape[0]

    # ----- host/XLA-side fusions (all cheap layout plumbing) -----
    pe_b = jnp.broadcast_to(pe[None], (b, n, pd))
    node_pe = jnp.concatenate([node_obs, pe_b], axis=-1)                      # [B, N, nf+pd]
    w_embed = jnp.concatenate([params['wn'], params['wpe']], axis=0)          # [nf+pd, D]
    b_embed = params['bn'] + params['bpe']                                    # [1, D]
    wqkv = jnp.concatenate([params['wq'], params['wk'], params['wv']],
                           axis=-1)                                           # [L, D, 3D]
    wo = params['wo']                                                         # [L, D, D]
    bo = params['bo']                                                         # [L, 1, D]
    wac = jnp.concatenate([params['wa'], params['wc']], axis=-1)              # [D, A+1]
    bac = jnp.concatenate([params['ba'], params['bc']], axis=-1)              # [1, A+1]

    smem = pl.BlockSpec(memory_space=pltpu.MemorySpace.SMEM)

    def const(ndim):
        return lambda i: (0,) * ndim

    in_specs = [
        smem,                                                     # tgt  [B]
        smem,                                                     # we   [E, H]
        smem,                                                     # be   [1, H]
        pl.BlockSpec((None, n, nf + pd), lambda i: (i, 0, 0)),    # node_pe
        pl.BlockSpec((None, ef, n, n), lambda i: (i, 0, 0, 0)),   # edge_obs_t
        pl.BlockSpec((nf + pd, d), const(2)),                     # w_embed
        pl.BlockSpec((1, d), const(2)),                           # b_embed
        pl.BlockSpec((n_layer, d, 3 * d), const(3)),              # wqkv
        pl.BlockSpec((n_layer, d, d), const(3)),                  # wo
        pl.BlockSpec((n_layer, 1, d), const(3)),                  # bo
        pl.BlockSpec((d, a + 1), const(2)),                       # wac
        pl.BlockSpec((1, a + 1), const(2)),                       # bac
    ]
    out_specs = pl.BlockSpec((None, 1, a + 1), lambda i: (i, 0, 0))

    out3 = pl.pallas_call(
        colight_kernel,
        grid=(b,),
        in_specs=in_specs,
        out_specs=out_specs,
        out_shape=jax.ShapeDtypeStruct((b, 1, a + 1), jnp.float32),
        compiler_params=pltpu.CompilerParams(
            dimension_semantics=("parallel",)),
    )(tgt, params['we'], params['be'],
      node_pe, edge_obs_t,
      w_embed, b_embed,
      wqkv, wo, bo,
      wac, bac)

    act = out3[:, 0, :a]
    if USE_PPO:
        return act, out3[:, 0, a:]
    return act


# ----------------------------- parameter init ----------------------------------
def init_params(key):
    ks = jax.random.split(key, 9)

    def w(k, shape, scale=0.1):
        return (scale * jax.random.normal(k, shape)).astype(jnp.float32)

    return dict(
        wn=w(ks[0], (NODE_FEAT, N_DIM)),
        bn=jnp.zeros((1, N_DIM), jnp.float32),
        wpe=w(ks[1], (PE_DIM, N_DIM)),
        bpe=jnp.zeros((1, N_DIM), jnp.float32),
        we=w(ks[2], (EDGE_FEAT, N_HEAD)),
        be=jnp.zeros((1, N_HEAD), jnp.float32),
        wq=w(ks[3], (N_LAYER, N_DIM, N_DIM)),
        wk=w(ks[4], (N_LAYER, N_DIM, N_DIM)),
        wv=w(ks[5], (N_LAYER, N_DIM, N_DIM)),
        wo=w(ks[6], (N_LAYER, N_DIM, N_DIM)),
        bo=jnp.zeros((N_LAYER, 1, N_DIM), jnp.float32),
        wa=w(ks[7], (N_DIM, ACT_SPACE)),
        ba=jnp.zeros((1, ACT_SPACE), jnp.float32),
        wc=w(ks[8], (N_DIM, 1)),
        bc=jnp.zeros((1, 1), jnp.float32),
    )


# ----------------------------------- main ---------------------------------------
if __name__ == "__main__":
    key = jax.random.PRNGKey(0)
    kx, kpe, kp = jax.random.split(key, 3)

    C = N_NODE + 2
    W = max(NODE_FEAT, EDGE_FEAT, 3)
    x = jax.random.normal(kx, (B, C, N_NODE, W), dtype=jnp.float32)
    # metadata channel (last channel, row 0): node_size, edge_size, target index
    x = x.at[:, -1, 0, 0].set(float(NODE_FEAT))
    x = x.at[:, -1, 0, 1].set(float(EDGE_FEAT))
    targets = jnp.array([3.0, 5.0], dtype=jnp.float32)
    x = x.at[:, -1, 0, 2].set(targets)

    position_encodings = jax.random.normal(kpe, (N_NODE, PE_DIM), dtype=jnp.float32)
    params = init_params(kp)

    act, cri = colight_forward(x, position_encodings, params)
    jax.block_until_ready((act, cri))

    assert act.shape == (B, ACT_SPACE)
    assert cri.shape == (B, 1)
    assert bool(jnp.all(jnp.isfinite(act))) and bool(jnp.all(jnp.isfinite(cri)))
    print("KERNEL_OK")
</pallas_src>

<mosaic_0001>
module attributes {stable_mosaic.version = 11 : i64} {
  func.func @colight_kernel(%arg0: i32, %arg1: memref<2xi32, #tpu.memory_space<smem>>, %arg2: memref<6x2xf32, #tpu.memory_space<smem>>, %arg3: memref<1x2xf32, #tpu.memory_space<smem>>, %arg4: memref<1x8x20xf32, #tpu.memory_space<vmem>>, %arg5: memref<1x6x8x8xf32, #tpu.memory_space<vmem>>, %arg6: memref<20x32xf32, #tpu.memory_space<vmem>>, %arg7: memref<1x32xf32, #tpu.memory_space<vmem>>, %arg8: memref<2x32x96xf32, #tpu.memory_space<vmem>>, %arg9: memref<2x32x32xf32, #tpu.memory_space<vmem>>, %arg10: memref<2x1x32xf32, #tpu.memory_space<vmem>>, %arg11: memref<32x5xf32, #tpu.memory_space<vmem>>, %arg12: memref<1x5xf32, #tpu.memory_space<vmem>>, %arg13: memref<1x1x5xf32, #tpu.memory_space<vmem>>) attributes {dimension_semantics = [#tpu.dimension_semantics<parallel>], iteration_bounds = array<i64: 2>, scalar_prefetch = 0 : i64, scratch_operands = 0 : i64, tpu.core_type = #tpu.core_type<tc>, window_params = [{transform_indices = @transform_0, window_bounds = array<i64: 2>}, {transform_indices = @transform_1, window_bounds = array<i64: 6, 2>}, {transform_indices = @transform_2, window_bounds = array<i64: 1, 2>}, {transform_indices = @transform_3, window_bounds = array<i64: 1, 8, 20>}, {transform_indices = @transform_4, window_bounds = array<i64: 1, 6, 8, 8>}, {pipeline_mode = #tpu.pipeline_mode<synchronous>, transform_indices = @transform_5, window_bounds = array<i64: 20, 32>}, {pipeline_mode = #tpu.pipeline_mode<synchronous>, transform_indices = @transform_6, window_bounds = array<i64: 1, 32>}, {pipeline_mode = #tpu.pipeline_mode<synchronous>, transform_indices = @transform_7, window_bounds = array<i64: 2, 32, 96>}, {pipeline_mode = #tpu.pipeline_mode<synchronous>, transform_indices = @transform_8, window_bounds = array<i64: 2, 32, 32>}, {pipeline_mode = #tpu.pipeline_mode<synchronous>, transform_indices = @transform_9, window_bounds = array<i64: 2, 1, 32>}, {pipeline_mode = #tpu.pipeline_mode<synchronous>, transform_indices = @transform_10, window_bounds = array<i64: 32, 5>}, {pipeline_mode = #tpu.pipeline_mode<synchronous>, transform_indices = @transform_11, window_bounds = array<i64: 1, 5>}, {transform_indices = @transform_12, window_bounds = array<i64: 1, 1, 5>}]} {
    %c0 = arith.constant 0 : index
    %c0_0 = arith.constant 0 : index
    %c0_1 = arith.constant 0 : index
    %0 = vector.load %arg4[%c0, %c0_0, %c0_1] : memref<1x8x20xf32, #tpu.memory_space<vmem>>, vector<1x8x20xf32>
    %1 = vector.shape_cast %0 : vector<1x8x20xf32> to vector<8x20xf32>
    %c0_2 = arith.constant 0 : index
    %c0_3 = arith.constant 0 : index
    %2 = vector.load %arg6[%c0_2, %c0_3] : memref<20x32xf32, #tpu.memory_space<vmem>>, vector<20x32xf32>
    %cst = arith.constant dense<0.000000e+00> : vector<8x32xf32>
    %3 = tpu.matmul %1, %2, %cst {dimension_numbers = #tpu.dot_dimension_numbers<[1], [0], [0], [1], [0, 0, 1, 1], [], []>} : vector<8x20xf32>, vector<20x32xf32>, vector<8x32xf32> -> vector<8x32xf32>
    %c0_4 = arith.constant 0 : index
    %c0_5 = arith.constant 0 : index
    %4 = vector.load %arg7[%c0_4, %c0_5] : memref<1x32xf32, #tpu.memory_space<vmem>>, vector<1x32xf32>
    %5 = vector.broadcast %4 : vector<1x32xf32> to vector<8x32xf32>
    %6 = arith.addf %3, %5 : vector<8x32xf32>
    %c0_6 = arith.constant 0 : index
    %c0_7 = arith.constant 0 : index
    %c0_8 = arith.constant 0 : index
    %c0_9 = arith.constant 0 : index
    %7 = vector.load %arg5[%c0_6, %c0_7, %c0_8, %c0_9] : memref<1x6x8x8xf32, #tpu.memory_space<vmem>>, vector<1x6x8x8xf32>
    %8 = vector.shape_cast %7 : vector<1x6x8x8xf32> to vector<6x8x8xf32>
    %9 = vector.extract_strided_slice %8 {offsets = [0, 0, 0], sizes = [1, 8, 8], strides = [1, 1, 1]} : vector<6x8x8xf32> to vector<1x8x8xf32>
    %10 = vector.shape_cast %9 : vector<1x8x8xf32> to vector<8x8xf32>
    %c0_10 = arith.constant 0 : index
    %c0_11 = arith.constant 0 : index
    %11 = memref.load %arg2[%c0_10, %c0_11] : memref<6x2xf32, #tpu.memory_space<smem>>
    %12 = vector.broadcast %11 : f32 to vector<8x8xf32>
    %13 = arith.mulf %10, %12 : vector<8x8xf32>
    %14 = vector.extract_strided_slice %8 {offsets = [1, 0, 0], sizes = [1, 8, 8], strides = [1, 1, 1]} : vector<6x8x8xf32> to vector<1x8x8xf32>
    %15 = vector.shape_cast %14 : vector<1x8x8xf32> to vector<8x8xf32>
    %c1 = arith.constant 1 : index
    %c0_12 = arith.constant 0 : index
    %16 = memref.load %arg2[%c1, %c0_12] : memref<6x2xf32, #tpu.memory_space<smem>>
    %17 = vector.broadcast %16 : f32 to vector<8x8xf32>
    %18 = arith.mulf %15, %17 : vector<8x8xf32>
    %19 = arith.addf %13, %18 : vector<8x8xf32>
    %20 = vector.extract_strided_slice %8 {offsets = [2, 0, 0], sizes = [1, 8, 8], strides = [1, 1, 1]} : vector<6x8x8xf32> to vector<1x8x8xf32>
    %21 = vector.shape_cast %20 : vector<1x8x8xf32> to vector<8x8xf32>
    %c2 = arith.constant 2 : index
    %c0_13 = arith.constant 0 : index
    %22 = memref.load %arg2[%c2, %c0_13] : memref<6x2xf32, #tpu.memory_space<smem>>
    %23 = vector.broadcast %22 : f32 to vector<8x8xf32>
    %24 = arith.mulf %21, %23 : vector<8x8xf32>
    %25 = arith.addf %19, %24 : vector<8x8xf32>
    %26 = vector.extract_strided_slice %8 {offsets = [3, 0, 0], sizes = [1, 8, 8], strides = [1, 1, 1]} : vector<6x8x8xf32> to vector<1x8x8xf32>
    %27 = vector.shape_cast %26 : vector<1x8x8xf32> to vector<8x8xf32>
    %c3 = arith.constant 3 : index
    %c0_14 = arith.constant 0 : index
    %28 = memref.load %arg2[%c3, %c0_14] : memref<6x2xf32, #tpu.memory_space<smem>>
    %29 = vector.broadcast %28 : f32 to vector<8x8xf32>
    %30 = arith.mulf %27, %29 : vector<8x8xf32>
    %31 = arith.addf %25, %30 : vector<8x8xf32>
    %32 = vector.extract_strided_slice %8 {offsets = [4, 0, 0], sizes = [1, 8, 8], strides = [1, 1, 1]} : vector<6x8x8xf32> to vector<1x8x8xf32>
    %33 = vector.shape_cast %32 : vector<1x8x8xf32> to vector<8x8xf32>
    %c4 = arith.constant 4 : index
    %c0_15 = arith.constant 0 : index
    %34 = memref.load %arg2[%c4, %c0_15] : memref<6x2xf32, #tpu.memory_space<smem>>
    %35 = vector.broadcast %34 : f32 to vector<8x8xf32>
    %36 = arith.mulf %33, %35 : vector<8x8xf32>
    %37 = arith.addf %31, %36 : vector<8x8xf32>
    %38 = vector.extract_strided_slice %8 {offsets = [5, 0, 0], sizes = [1, 8, 8], strides = [1, 1, 1]} : vector<6x8x8xf32> to vector<1x8x8xf32>
    %39 = vector.shape_cast %38 : vector<1x8x8xf32> to vector<8x8xf32>
    %c5 = arith.constant 5 : index
    %c0_16 = arith.constant 0 : index
    %40 = memref.load %arg2[%c5, %c0_16] : memref<6x2xf32, #tpu.memory_space<smem>>
    %41 = vector.broadcast %40 : f32 to vector<8x8xf32>
    %42 = arith.mulf %39, %41 : vector<8x8xf32>
    %43 = arith.addf %37, %42 : vector<8x8xf32>
    %c0_17 = arith.constant 0 : index
    %c0_18 = arith.constant 0 : index
    %44 = memref.load %arg3[%c0_17, %c0_18] : memref<1x2xf32, #tpu.memory_space<smem>>
    %45 = vector.broadcast %44 : f32 to vector<8x8xf32>
    %46 = arith.addf %43, %45 : vector<8x8xf32>
    %47 = vector.extract_strided_slice %8 {offsets = [0, 0, 0], sizes = [1, 8, 8], strides = [1, 1, 1]} : vector<6x8x8xf32> to vector<1x8x8xf32>
    %48 = vector.shape_cast %47 : vector<1x8x8xf32> to vector<8x8xf32>
    %c0_19 = arith.constant 0 : index
    %c1_20 = arith.constant 1 : index
    %49 = memref.load %arg2[%c0_19, %c1_20] : memref<6x2xf32, #tpu.memory_space<smem>>
    %50 = vector.broadcast %49 : f32 to vector<8x8xf32>
    %51 = arith.mulf %48, %50 : vector<8x8xf32>
    %52 = vector.extract_strided_slice %8 {offsets = [1, 0, 0], sizes = [1, 8, 8], strides = [1, 1, 1]} : vector<6x8x8xf32> to vector<1x8x8xf32>
    %53 = vector.shape_cast %52 : vector<1x8x8xf32> to vector<8x8xf32>
    %c1_21 = arith.constant 1 : index
    %c1_22 = arith.constant 1 : index
    %54 = memref.load %arg2[%c1_21, %c1_22] : memref<6x2xf32, #tpu.memory_space<smem>>
    %55 = vector.broadcast %54 : f32 to vector<8x8xf32>
    %56 = arith.mulf %53, %55 : vector<8x8xf32>
    %57 = arith.addf %51, %56 : vector<8x8xf32>
    %58 = vector.extract_strided_slice %8 {offsets = [2, 0, 0], sizes = [1, 8, 8], strides = [1, 1, 1]} : vector<6x8x8xf32> to vector<1x8x8xf32>
    %59 = vector.shape_cast %58 : vector<1x8x8xf32> to vector<8x8xf32>
    %c2_23 = arith.constant 2 : index
    %c1_24 = arith.constant 1 : index
    %60 = memref.load %arg2[%c2_23, %c1_24] : memref<6x2xf32, #tpu.memory_space<smem>>
    %61 = vector.broadcast %60 : f32 to vector<8x8xf32>
    %62 = arith.mulf %59, %61 : vector<8x8xf32>
    %63 = arith.addf %57, %62 : vector<8x8xf32>
    %64 = vector.extract_strided_slice %8 {offsets = [3, 0, 0], sizes = [1, 8, 8], strides = [1, 1, 1]} : vector<6x8x8xf32> to vector<1x8x8xf32>
    %65 = vector.shape_cast %64 : vector<1x8x8xf32> to vector<8x8xf32>
    %c3_25 = arith.constant 3 : index
    %c1_26 = arith.constant 1 : index
    %66 = memref.load %arg2[%c3_25, %c1_26] : memref<6x2xf32, #tpu.memory_space<smem>>
    %67 = vector.broadcast %66 : f32 to vector<8x8xf32>
    %68 = arith.mulf %65, %67 : vector<8x8xf32>
    %69 = arith.addf %63, %68 : vector<8x8xf32>
    %70 = vector.extract_strided_slice %8 {offsets = [4, 0, 0], sizes = [1, 8, 8], strides = [1, 1, 1]} : vector<6x8x8xf32> to vector<1x8x8xf32>
    %71 = vector.shape_cast %70 : vector<1x8x8xf32> to vector<8x8xf32>
    %c4_27 = arith.constant 4 : index
    %c1_28 = arith.constant 1 : index
    %72 = memref.load %arg2[%c4_27, %c1_28] : memref<6x2xf32, #tpu.memory_space<smem>>
    %73 = vector.broadcast %72 : f32 to vector<8x8xf32>
    %74 = arith.mulf %71, %73 : vector<8x8xf32>
    %75 = arith.addf %69, %74 : vector<8x8xf32>
    %76 = vector.extract_strided_slice %8 {offsets = [5, 0, 0], sizes = [1, 8, 8], strides = [1, 1, 1]} : vector<6x8x8xf32> to vector<1x8x8xf32>
    %77 = vector.shape_cast %76 : vector<1x8x8xf32> to vector<8x8xf32>
    %c5_29 = arith.constant 5 : index
    %c1_30 = arith.constant 1 : index
    %78 = memref.load %arg2[%c5_29, %c1_30] : memref<6x2xf32, #tpu.memory_space<smem>>
    %79 = vector.broadcast %78 : f32 to vector<8x8xf32>
    %80 = arith.mulf %77, %79 : vector<8x8xf32>
    %81 = arith.addf %75, %80 : vector<8x8xf32>
    %c0_31 = arith.constant 0 : index
    %c1_32 = arith.constant 1 : index
    %82 = memref.load %arg3[%c0_31, %c1_32] : memref<1x2xf32, #tpu.memory_space<smem>>
    %83 = vector.broadcast %82 : f32 to vector<8x8xf32>
    %84 = arith.addf %81, %83 : vector<8x8xf32>
    %c0_33 = arith.constant 0 : index
    %c0_34 = arith.constant 0 : index
    %c0_35 = arith.constant 0 : index
    %85 = vector.load %arg8[%c0_33, %c0_34, %c0_35] : memref<2x32x96xf32, #tpu.memory_space<vmem>>, vector<1x32x96xf32>
    %86 = vector.shape_cast %85 : vector<1x32x96xf32> to vector<32x96xf32>
    %cst_36 = arith.constant dense<0.000000e+00> : vector<8x96xf32>
    %87 = tpu.matmul %6, %86, %cst_36 {dimension_numbers = #tpu.dot_dimension_numbers<[1], [0], [0], [1], [0, 0, 1, 1], [], []>} : vector<8x32xf32>, vector<32x96xf32>, vector<8x96xf32> -> vector<8x96xf32>
    %88 = vector.extract_strided_slice %87 {offsets = [0, 0], sizes = [8, 16], strides = [1, 1]} : vector<8x96xf32> to vector<8x16xf32>
    %89 = vector.extract_strided_slice %87 {offsets = [0, 32], sizes = [8, 16], strides = [1, 1]} : vector<8x96xf32> to vector<8x16xf32>
    %90 = vector.extract_strided_slice %87 {offsets = [0, 64], sizes = [8, 16], strides = [1, 1]} : vector<8x96xf32> to vector<8x16xf32>
    %91 = tpu.transpose %89, [1, 0] : vector<8x16xf32> -> vector<16x8xf32>
    %cst_37 = arith.constant dense<0.000000e+00> : vector<8x8xf32>
    %92 = tpu.matmul %88, %91, %cst_37 {dimension_numbers = #tpu.dot_dimension_numbers<[1], [0], [0], [1], [0, 0, 1, 1], [], []>} : vector<8x16xf32>, vector<16x8xf32>, vector<8x8xf32> -> vector<8x8xf32>
    %cst_38 = arith.constant 2.500000e-01 : f32
    %93 = vector.broadcast %cst_38 : f32 to vector<8x8xf32>
    %94 = arith.mulf %92, %93 : vector<8x8xf32>
    %95 = arith.addf %94, %46 : vector<8x8xf32>
    %96 = arith.addf %46, %95 : vector<8x8xf32>
    %cst_39 = arith.constant dense<0xFF800000> : vector<8xf32>
    %97 = vector.multi_reduction <maximumf>, %95, %cst_39 [1] : vector<8x8xf32> to vector<8xf32>
    %98 = vector.shape_cast %97 : vector<8xf32> to vector<8x1xf32>
    %99 = vector.broadcast %98 : vector<8x1xf32> to vector<8x8xf32>
    %100 = arith.subf %95, %99 : vector<8x8xf32>
    %101 = math.exp %100 : vector<8x8xf32>
    %cst_40 = arith.constant dense<0.000000e+00> : vector<8xf32>
    %102 = vector.multi_reduction <add>, %101, %cst_40 [1] : vector<8x8xf32> to vector<8xf32>
    %103 = vector.shape_cast %102 : vector<8xf32> to vector<8x1xf32>
    %104 = tpu.reciprocal %103 {approx = true} : vector<8x1xf32> -> vector<8x1xf32>
    %105 = vector.broadcast %104 : vector<8x1xf32> to vector<8x8xf32>
    %106 = arith.mulf %101, %105 : vector<8x8xf32>
    %cst_41 = arith.constant dense<0.000000e+00> : vector<8x16xf32>
    %107 = tpu.matmul %106, %90, %cst_41 {dimension_numbers = #tpu.dot_dimension_numbers<[1], [0], [0], [1], [0, 0, 1, 1], [], []>} : vector<8x8xf32>, vector<8x16xf32>, vector<8x16xf32> -> vector<8x16xf32>
    %108 = vector.extract_strided_slice %87 {offsets = [0, 16], sizes = [8, 16], strides = [1, 1]} : vector<8x96xf32> to vector<8x16xf32>
    %109 = vector.extract_strided_slice %87 {offsets = [0, 48], sizes = [8, 16], strides = [1, 1]} : vector<8x96xf32> to vector<8x16xf32>
    %110 = vector.extract_strided_slice %87 {offsets = [0, 80], sizes = [8, 16], strides = [1, 1]} : vector<8x96xf32> to vector<8x16xf32>
    %111 = tpu.transpose %109, [1, 0] : vector<8x16xf32> -> vector<16x8xf32>
    %cst_42 = arith.constant dense<0.000000e+00> : vector<8x8xf32>
    %112 = tpu.matmul %108, %111, %cst_42 {dimension_numbers = #tpu.dot_dimension_numbers<[1], [0], [0], [1], [0, 0, 1, 1], [], []>} : vector<8x16xf32>, vector<16x8xf32>, vector<8x8xf32> -> vector<8x8xf32>
    %cst_43 = arith.constant 2.500000e-01 : f32
    %113 = vector.broadcast %cst_43 : f32 to vector<8x8xf32>
    %114 = arith.mulf %112, %113 : vector<8x8xf32>
    %115 = arith.addf %114, %84 : vector<8x8xf32>
    %116 = arith.addf %84, %115 : vector<8x8xf32>
    %cst_44 = arith.constant dense<0xFF800000> : vector<8xf32>
    %117 = vector.multi_reduction <maximumf>, %115, %cst_44 [1] : vector<8x8xf32> to vector<8xf32>
    %118 = vector.shape_cast %117 : vector<8xf32> to vector<8x1xf32>
    %119 = vector.broadcast %118 : vector<8x1xf32> to vector<8x8xf32>
    %120 = arith.subf %115, %119 : vector<8x8xf32>
    %121 = math.exp %120 : vector<8x8xf32>
    %cst_45 = arith.constant dense<0.000000e+00> : vector<8xf32>
    %122 = vector.multi_reduction <add>, %121, %cst_45 [1] : vector<8x8xf32> to vector<8xf32>
    %123 = vector.shape_cast %122 : vector<8xf32> to vector<8x1xf32>
    %124 = tpu.reciprocal %123 {approx = true} : vector<8x1xf32> -> vector<8x1xf32>
    %125 = vector.broadcast %124 : vector<8x1xf32> to vector<8x8xf32>
    %126 = arith.mulf %121, %125 : vector<8x8xf32>
    %cst_46 = arith.constant dense<0.000000e+00> : vector<8x16xf32>
    %127 = tpu.matmul %126, %110, %cst_46 {dimension_numbers = #tpu.dot_dimension_numbers<[1], [0], [0], [1], [0, 0, 1, 1], [], []>} : vector<8x8xf32>, vector<8x16xf32>, vector<8x16xf32> -> vector<8x16xf32>
    %128 = tpu.concatenate %107, %127 in 1 : vector<8x16xf32>, vector<8x16xf32> -> vector<8x32xf32>
    %c0_47 = arith.constant 0 : index
    %c0_48 = arith.constant 0 : index
    %c0_49 = arith.constant 0 : index
    %129 = vector.load %arg9[%c0_47, %c0_48, %c0_49] : memref<2x32x32xf32, #tpu.memory_space<vmem>>, vector<1x32x32xf32>
    %130 = vector.shape_cast %129 : vector<1x32x32xf32> to vector<32x32xf32>
    %cst_50 = arith.constant dense<0.000000e+00> : vector<8x32xf32>
    %131 = tpu.matmul %128, %130, %cst_50 {dimension_numbers = #tpu.dot_dimension_numbers<[1], [0], [0], [1], [0, 0, 1, 1], [], []>} : vector<8x32xf32>, vector<32x32xf32>, vector<8x32xf32> -> vector<8x32xf32>
    %132 = arith.addf %6, %131 : vector<8x32xf32>
    %c0_51 = arith.constant 0 : index
    %c0_52 = arith.constant 0 : index
    %c0_53 = arith.constant 0 : index
    %133 = vector.load %arg10[%c0_51, %c0_52, %c0_53] : memref<2x1x32xf32, #tpu.memory_space<vmem>>, vector<1x1x32xf32>
    %134 = vector.shape_cast %133 : vector<1x1x32xf32> to vector<1x32xf32>
    %135 = vector.broadcast %134 : vector<1x32xf32> to vector<8x32xf32>
    %136 = arith.addf %132, %135 : vector<8x32xf32>
    %c1_54 = arith.constant 1 : index
    %c0_55 = arith.constant 0 : index
    %c0_56 = arith.constant 0 : index
    %137 = vector.load %arg8[%c1_54, %c0_55, %c0_56] : memref<2x32x96xf32, #tpu.memory_space<vmem>>, vector<1x32x96xf32>
    %138 = vector.shape_cast %137 : vector<1x32x96xf32> to vector<32x96xf32>
    %cst_57 = arith.constant dense<0.000000e+00> : vector<8x96xf32>
    %139 = tpu.matmul %136, %138, %cst_57 {dimension_numbers = #tpu.dot_dimension_numbers<[1], [0], [0], [1], [0, 0, 1, 1], [], []>} : vector<8x32xf32>, vector<32x96xf32>, vector<8x96xf32> -> vector<8x96xf32>
    %140 = vector.extract_strided_slice %139 {offsets = [0, 0], sizes = [8, 16], strides = [1, 1]} : vector<8x96xf32> to vector<8x16xf32>
    %141 = vector.extract_strided_slice %139 {offsets = [0, 32], sizes = [8, 16], strides = [1, 1]} : vector<8x96xf32> to vector<8x16xf32>
    %142 = vector.extract_strided_slice %139 {offsets = [0, 64], sizes = [8, 16], strides = [1, 1]} : vector<8x96xf32> to vector<8x16xf32>
    %143 = tpu.transpose %141, [1, 0] : vector<8x16xf32> -> vector<16x8xf32>
    %cst_58 = arith.constant dense<0.000000e+00> : vector<8x8xf32>
    %144 = tpu.matmul %140, %143, %cst_58 {dimension_numbers = #tpu.dot_dimension_numbers<[1], [0], [0], [1], [0, 0, 1, 1], [], []>} : vector<8x16xf32>, vector<16x8xf32>, vector<8x8xf32> -> vector<8x8xf32>
    %cst_59 = arith.constant 2.500000e-01 : f32
    %145 = vector.broadcast %cst_59 : f32 to vector<8x8xf32>
    %146 = arith.mulf %144, %145 : vector<8x8xf32>
    %147 = arith.addf %146, %96 : vector<8x8xf32>
    %cst_60 = arith.constant dense<0xFF800000> : vector<8xf32>
    %148 = vector.multi_reduction <maximumf>, %147, %cst_60 [1] : vector<8x8xf32> to vector<8xf32>
    %149 = vector.shape_cast %148 : vector<8xf32> to vector<8x1xf32>
    %150 = vector.broadcast %149 : vector<8x1xf32> to vector<8x8xf32>
    %151 = arith.subf %147, %150 : vector<8x8xf32>
    %152 = math.exp %151 : vector<8x8xf32>
    %cst_61 = arith.constant dense<0.000000e+00> : vector<8xf32>
    %153 = vector.multi_reduction <add>, %152, %cst_61 [1] : vector<8x8xf32> to vector<8xf32>
    %154 = vector.shape_cast %153 : vector<8xf32> to vector<8x1xf32>
    %155 = tpu.reciprocal %154 {approx = true} : vector<8x1xf32> -> vector<8x1xf32>
    %156 = vector.broadcast %155 : vector<8x1xf32> to vector<8x8xf32>
    %157 = arith.mulf %152, %156 : vector<8x8xf32>
    %cst_62 = arith.constant dense<0.000000e+00> : vector<8x16xf32>
    %158 = tpu.matmul %157, %142, %cst_62 {dimension_numbers = #tpu.dot_dimension_numbers<[1], [0], [0], [1], [0, 0, 1, 1], [], []>} : vector<8x8xf32>, vector<8x16xf32>, vector<8x16xf32> -> vector<8x16xf32>
    %159 = vector.extract_strided_slice %139 {offsets = [0, 16], sizes = [8, 16], strides = [1, 1]} : vector<8x96xf32> to vector<8x16xf32>
    %160 = vector.extract_strided_slice %139 {offsets = [0, 48], sizes = [8, 16], strides = [1, 1]} : vector<8x96xf32> to vector<8x16xf32>
    %161 = vector.extract_strided_slice %139 {offsets = [0, 80], sizes = [8, 16], strides = [1, 1]} : vector<8x96xf32> to vector<8x16xf32>
    %162 = tpu.transpose %160, [1, 0] : vector<8x16xf32> -> vector<16x8xf32>
    %cst_63 = arith.constant dense<0.000000e+00> : vector<8x8xf32>
    %163 = tpu.matmul %159, %162, %cst_63 {dimension_numbers = #tpu.dot_dimension_numbers<[1], [0], [0], [1], [0, 0, 1, 1], [], []>} : vector<8x16xf32>, vector<16x8xf32>, vector<8x8xf32> -> vector<8x8xf32>
    %cst_64 = arith.constant 2.500000e-01 : f32
    %164 = vector.broadcast %cst_64 : f32 to vector<8x8xf32>
    %165 = arith.mulf %163, %164 : vector<8x8xf32>
    %166 = arith.addf %165, %116 : vector<8x8xf32>
    %cst_65 = arith.constant dense<0xFF800000> : vector<8xf32>
    %167 = vector.multi_reduction <maximumf>, %166, %cst_65 [1] : vector<8x8xf32> to vector<8xf32>
    %168 = vector.shape_cast %167 : vector<8xf32> to vector<8x1xf32>
    %169 = vector.broadcast %168 : vector<8x1xf32> to vector<8x8xf32>
    %170 = arith.subf %166, %169 : vector<8x8xf32>
    %171 = math.exp %170 : vector<8x8xf32>
    %cst_66 = arith.constant dense<0.000000e+00> : vector<8xf32>
    %172 = vector.multi_reduction <add>, %171, %cst_66 [1] : vector<8x8xf32> to vector<8xf32>
    %173 = vector.shape_cast %172 : vector<8xf32> to vector<8x1xf32>
    %174 = tpu.reciprocal %173 {approx = true} : vector<8x1xf32> -> vector<8x1xf32>
    %175 = vector.broadcast %174 : vector<8x1xf32> to vector<8x8xf32>
    %176 = arith.mulf %171, %175 : vector<8x8xf32>
    %cst_67 = arith.constant dense<0.000000e+00> : vector<8x16xf32>
    %177 = tpu.matmul %176, %161, %cst_67 {dimension_numbers = #tpu.dot_dimension_numbers<[1], [0], [0], [1], [0, 0, 1, 1], [], []>} : vector<8x8xf32>, vector<8x16xf32>, vector<8x16xf32> -> vector<8x16xf32>
    %178 = tpu.concatenate %158, %177 in 1 : vector<8x16xf32>, vector<8x16xf32> -> vector<8x32xf32>
    %c1_68 = arith.constant 1 : index
    %c0_69 = arith.constant 0 : index
    %c0_70 = arith.constant 0 : index
    %179 = vector.load %arg9[%c1_68, %c0_69, %c0_70] : memref<2x32x32xf32, #tpu.memory_space<vmem>>, vector<1x32x32xf32>
    %180 = vector.shape_cast %179 : vector<1x32x32xf32> to vector<32x32xf32>
    %cst_71 = arith.constant dense<0.000000e+00> : vector<8x32xf32>
    %181 = tpu.matmul %178, %180, %cst_71 {dimension_numbers = #tpu.dot_dimension_numbers<[1], [0], [0], [1], [0, 0, 1, 1], [], []>} : vector<8x32xf32>, vector<32x32xf32>, vector<8x32xf32> -> vector<8x32xf32>
    %182 = arith.addf %136, %181 : vector<8x32xf32>
    %c1_72 = arith.constant 1 : index
    %c0_73 = arith.constant 0 : index
    %c0_74 = arith.constant 0 : index
    %183 = vector.load %arg10[%c1_72, %c0_73, %c0_74] : memref<2x1x32xf32, #tpu.memory_space<vmem>>, vector<1x1x32xf32>
    %184 = vector.shape_cast %183 : vector<1x1x32xf32> to vector<1x32xf32>
    %185 = vector.broadcast %184 : vector<1x32xf32> to vector<8x32xf32>
    %186 = arith.addf %182, %185 : vector<8x32xf32>
    %187 = arith.index_cast %arg0 : i32 to index
    %188 = memref.load %arg1[%187] : memref<2xi32, #tpu.memory_space<smem>>
    %189 = tpu.iota {dimensions = array<i32: 0>} : vector<8x1xi32>
    %190 = vector.broadcast %188 : i32 to vector<8x1xi32>
    %191 = arith.cmpi eq, %189, %190 : vector<8x1xi32>
    %cst_75 = arith.constant 0.000000e+00 : f32
    %192 = vector.shape_cast %191 : vector<8x1xi1> to vector<8x1xi1>
    %193 = vector.broadcast %192 : vector<8x1xi1> to vector<8x32xi1>
    %194 = vector.broadcast %cst_75 : f32 to vector<8x32xf32>
    %195 = arith.select %193, %186, %194 : vector<8x32xi1>, vector<8x32xf32>
    %cst_76 = arith.constant dense<0.000000e+00> : vector<32xf32>
    %196 = vector.multi_reduction <add>, %195, %cst_76 [0] : vector<8x32xf32> to vector<32xf32>
    %197 = vector.shape_cast %196 : vector<32xf32> to vector<1x32xf32>
    %c0_77 = arith.constant 0 : index
    %c0_78 = arith.constant 0 : index
    %198 = vector.load %arg11[%c0_77, %c0_78] : memref<32x5xf32, #tpu.memory_space<vmem>>, vector<32x5xf32>
    %cst_79 = arith.constant dense<0.000000e+00> : vector<1x5xf32>
    %199 = tpu.matmul %197, %198, %cst_79 {dimension_numbers = #tpu.dot_dimension_numbers<[1], [0], [0], [1], [0, 0, 1, 1], [], []>} : vector<1x32xf32>, vector<32x5xf32>, vector<1x5xf32> -> vector<1x5xf32>
    %c0_80 = arith.constant 0 : index
    %c0_81 = arith.constant 0 : index
    %200 = vector.load %arg12[%c0_80, %c0_81] : memref<1x5xf32, #tpu.memory_space<vmem>>, vector<1x5xf32>
    %201 = arith.addf %199, %200 : vector<1x5xf32>
    %202 = vector.extract_strided_slice %201 {offsets = [0, 0], sizes = [1, 4], strides = [1, 1]} : vector<1x5xf32> to vector<1x4xf32>
    %cst_82 = arith.constant dense<0xFF800000> : vector<1xf32>
    %203 = vector.multi_reduction <maximumf>, %202, %cst_82 [1] : vector<1x4xf32> to vector<1xf32>
    %204 = vector.shape_cast %203 : vector<1xf32> to vector<1x1xf32>
    %205 = vector.broadcast %204 : vector<1x1xf32> to vector<1x4xf32>
    %206 = arith.subf %202, %205 : vector<1x4xf32>
    %207 = math.exp %206 : vector<1x4xf32>
    %cst_83 = arith.constant dense<0.000000e+00> : vector<1xf32>
    %208 = vector.multi_reduction <add>, %207, %cst_83 [1] : vector<1x4xf32> to vector<1xf32>
    %209 = vector.shape_cast %208 : vector<1xf32> to vector<1x1xf32>
    %210 = tpu.reciprocal %209 {approx = true} : vector<1x1xf32> -> vector<1x1xf32>
    %211 = vector.broadcast %210 : vector<1x1xf32> to vector<1x4xf32>
    %212 = arith.mulf %207, %211 : vector<1x4xf32>
    %213 = vector.extract_strided_slice %201 {offsets = [0, 4], sizes = [1, 1], strides = [1, 1]} : vector<1x5xf32> to vector<1x1xf32>
    %214 = tpu.concatenate %212, %213 in 1 : vector<1x4xf32>, vector<1x1xf32> -> vector<1x5xf32>
    %c0_84 = arith.constant 0 : index
    %c0_85 = arith.constant 0 : index
    %c0_86 = arith.constant 0 : index
    %215 = vector.load %arg13[%c0_84, %c0_85, %c0_86] : memref<1x1x5xf32, #tpu.memory_space<vmem>>, vector<1x1x5xf32>
    %216 = vector.shape_cast %215 : vector<1x1x5xf32> to vector<1x5xf32>
    %217 = vector.shape_cast %214 : vector<1x5xf32> to vector<1x1x5xf32>
    tpu.vector_store %arg13[%c0_84, %c0_85, %c0_86], %217 {strides = array<i32>} : memref<1x1x5xf32, #tpu.memory_space<vmem>>, vector<1x1x5xf32>,
    return
  }
  func.func @transform_0(%arg0: i32) -> i32 {
    %c0_i32 = arith.constant 0 : i32
    %c0_i32_0 = arith.constant 0 : i32
    return %c0_i32 : i32
  }
  func.func @transform_1(%arg0: i32) -> (i32, i32) {
    %c0_i32 = arith.constant 0 : i32
    %c0_i32_0 = arith.constant 0 : i32
    %c0_i32_1 = arith.constant 0 : i32
    return %c0_i32, %c0_i32_0 : i32, i32
  }
  func.func @transform_2(%arg0: i32) -> (i32, i32) {
    %c0_i32 = arith.constant 0 : i32
    %c0_i32_0 = arith.constant 0 : i32
    %c0_i32_1 = arith.constant 0 : i32
    return %c0_i32, %c0_i32_0 : i32, i32
  }
  func.func @transform_3(%arg0: i32) -> (i32, i32, i32) {
    %c0_i32 = arith.constant 0 : i32
    %c0_i32_0 = arith.constant 0 : i32
    %c0_i32_1 = arith.constant 0 : i32
    return %arg0, %c0_i32, %c0_i32_0 : i32, i32, i32
  }
  func.func @transform_4(%arg0: i32) -> (i32, i32, i32, i32) {
    %c0_i32 = arith.constant 0 : i32
    %c0_i32_0 = arith.constant 0 : i32
    %c0_i32_1 = arith.constant 0 : i32
    %c0_i32_2 = arith.constant 0 : i32
    return %arg0, %c0_i32, %c0_i32_0, %c0_i32_1 : i32, i32, i32, i32
  }
  func.func @transform_5(%arg0: i32) -> (i32, i32) {
    %c0_i32 = arith.constant 0 : i32
    %c0_i32_0 = arith.constant 0 : i32
    %c0_i32_1 = arith.constant 0 : i32
    return %c0_i32, %c0_i32_0 : i32, i32
  }
  func.func @transform_6(%arg0: i32) -> (i32, i32) {
    %c0_i32 = arith.constant 0 : i32
    %c0_i32_0 = arith.constant 0 : i32
    %c0_i32_1 = arith.constant 0 : i32
    return %c0_i32, %c0_i32_0 : i32, i32
  }
  func.func @transform_7(%arg0: i32) -> (i32, i32, i32) {
    %c0_i32 = arith.constant 0 : i32
    %c0_i32_0 = arith.constant 0 : i32
    %c0_i32_1 = arith.constant 0 : i32
    %c0_i32_2 = arith.constant 0 : i32
    return %c0_i32, %c0_i32_0, %c0_i32_1 : i32, i32, i32
  }
  func.func @transform_8(%arg0: i32) -> (i32, i32, i32) {
    %c0_i32 = arith.constant 0 : i32
    %c0_i32_0 = arith.constant 0 : i32
    %c0_i32_1 = arith.constant 0 : i32
    %c0_i32_2 = arith.constant 0 : i32
    return %c0_i32, %c0_i32_0, %c0_i32_1 : i32, i32, i32
  }
  func.func @transform_9(%arg0: i32) -> (i32, i32, i32) {
    %c0_i32 = arith.constant 0 : i32
    %c0_i32_0 = arith.constant 0 : i32
    %c0_i32_1 = arith.constant 0 : i32
    %c0_i32_2 = arith.constant 0 : i32
    return %c0_i32, %c0_i32_0, %c0_i32_1 : i32, i32, i32
  }
  func.func @transform_10(%arg0: i32) -> (i32, i32) {
    %c0_i32 = arith.constant 0 : i32
    %c0_i32_0 = arith.constant 0 : i32
    %c0_i32_1 = arith.constant 0 : i32
    return %c0_i32, %c0_i32_0 : i32, i32
  }
  func.func @transform_11(%arg0: i32) -> (i32, i32) {
    %c0_i32 = arith.constant 0 : i32
    %c0_i32_0 = arith.constant 0 : i32
    %c0_i32_1 = arith.constant 0 : i32
    return %c0_i32, %c0_i32_0 : i32, i32
  }
  func.func @transform_12(%arg0: i32) -> (i32, i32, i32) {
    %c0_i32 = arith.constant 0 : i32
    %c0_i32_0 = arith.constant 0 : i32
    %c0_i32_1 = arith.constant 0 : i32
    return %arg0, %c0_i32, %c0_i32_0 : i32, i32, i32
  }
}

</mosaic_0001>

<bundles_post_ra>
// kernel: colight_forward.1
= control target key start
LH: loop header
LB: loop body
LE: loop exit
PB: predicated region body
PF: predicated region fallthrough
CT: control target
= control target key end

     0   :  { %17 = vsyncpa [#allocation3], 0  ;;  %s2542_s0 = inlined_call_operand.vmem [shape: s32[2], index: 0, kind: input, shape index: {}]   ;;  %s2543_s1 = inlined_call_operand.vmem [shape: f32[6,2], index: 1, kind: input, shape index: {}]   ;;  %s2544_s2 = inlined_call_operand.vmem [shape: f32[1,2], index: 2, kind: input, shape index: {}]   ;;  %s2545_s3 = inlined_call_operand.vmem [shape: f32[2,8,20], index: 3, kind: input, shape index: {}]   ;;  %s2546_s4 = inlined_call_operand.vmem [shape: f32[2,6,8,8], index: 4, kind: input, shape index: {}]   ;;  %s2547_s5 = inlined_call_operand.vmem [shape: f32[20,32], index: 5, kind: input, shape index: {}]   ;;  %s2548_s6 = inlined_call_operand.vmem [shape: f32[1,32], index: 6, kind: input, shape index: {}]   ;;  %s2549_s7 = inlined_call_operand.vmem [shape: f32[2,32,96], index: 7, kind: input, shape index: {}]   ;;  %s2550_s8 = inlined_call_operand.vmem [shape: f32[2,32,32], index: 8, kind: input, shape index: {}]   ;;  %s2551_s9 = inlined_call_operand.vmem [shape: f32[2,1,32], index: 9, kind: input, shape index: {}]   ;;  %s2552_s10 = inlined_call_operand.vmem [shape: f32[32,5], index: 10, kind: input, shape index: {}]   ;;  %s2553_s11 = inlined_call_operand.vmem [shape: f32[1,5], index: 11, kind: input, shape index: {}]   ;;  %s2554_s12 = inlined_call_operand.vmem [shape: f32[2,1,5], index: 12, kind: output, shape index: {}]  }
   0x1   :  { %18 = vsyncpa [#allocation5], 0  ;;  %s2234_s21 = smov 0  }
   0x2 LB: > { %s2240_s22 = sadd.s32 4294967295, %s2156_s21   ;;  %p1824_p0 = scmp.ge.s32.totalorder %s2156_s21, 1  ;;  %s2156_s21 = sphi %s2234_s21, %s24_s21  }
   0x3   : > { %p317_p1 = scmp.lt.s32.totalorder %s2156_s21, 3  ;;  %s341_s25 = sshll.u32 %s2543_s1, 4  ;;  %s342_s25 = int_to_ptr.vmem [resolvable:$true] %s341_s25 }
   0x4   : > { %p2555_p3 = scmp.eq.s32.totalorder %s2240_s22, 0  ;;  %s330_s29 = sshll.u32 %s2542_s0, 4  ;;  %s331_s29 = int_to_ptr.vmem [resolvable:$true] %s330_s29 }
   0x5   : > { %p2247_p2 = pnand %p1824_p0, %p317_p1  ;;  %s352_s14 = sshll.u32 %s2544_s2, 4  ;;  %s2266_s14 = int_to_ptr.vmem [resolvable:$true] %s352_s14 }
   0x6   : > { %s2097_s16 = scalar_lea.vmem %s342_s25, 128  ;;  %p2105_p10 = scmp.lt.s32.totalorder %s342_s25, %s342_s25 }
   0x7   : > { %s2557_s26 = scalar_select %p2247_p2, 1, 0 }
   0x8   : > { %p2042_p4 = pneg %p2247_p2  ;;  %p2098_p6 = scmp.ne.s32.totalorder %s342_s25, %s2097_s16 }
   0x9   : > { %p2106_p11 = scmp.lt.s32.totalorder %s2097_s16, %s2097_s16 }
   0xa   : > { %p2262_p5 = pnand %p2555_p3, %p2042_p4 }
   0xb   : > { %p2107_p12 = por %p2106_p11, %p2105_p10 }
   0xc   : > { %p2099_p7 = pneg %p2262_p5 }
   0xe   : > { %p2100_p8 = pnand %p2099_p7, %p2098_p6 }
  0x10   : > { %p2101_p9 = pneg %p2100_p8 }
  0x12   : > { %p2108_p13 = pnand %p2107_p12, %p2101_p9 }
  0x14   : > { %2111 = shalt.err (!%p2108_p13)
}
  0x15   : > { %s2158_s17 = smov [#allocation4]   ;;  %s2112_s18 = scalar_lea.vmem %s331_s29, 16 }
  0x16   : > { %2048 = dma.vmem_to_smem (!%p2262_p5), %s342_s25, 128, %s2158_s17, [#allocation5]  }
  0x17   : > { %p2113_p0 = scmp.ne.s32.totalorder %s331_s29, %s2112_s18  ;;  %p2120_p3 = scmp.lt.s32.totalorder %s331_s29, %s331_s29 }
  0x18   : > { %p2121_p2 = scmp.lt.s32.totalorder %s2112_s18, %s2112_s18 }
  0x19   : > { %p2115_p1 = pnand %p2113_p0, %p2099_p7 }
  0x1a   : > { %p2122_p6 = por %p2121_p2, %p2120_p3 }
  0x1b   : > { %p2116_p4 = pneg %p2115_p1 }
  0x1d   : > { %p2123_p8 = pnand %p2122_p6, %p2116_p4 }
  0x1f   : > { %2126 = shalt.err (!%p2123_p8)
}
  0x20   : > { %s2159_s19 = smov [#allocation2]   ;;  %s2127_s20 = scalar_lea.vmem %s2266_s14, 16 }
  0x21   : > { %2045 = dma.vmem_to_smem (!%p2262_p5), %s331_s29, 16, %s2159_s19, [#allocation3]  }
  0x22   : > { %p2128_p9 = scmp.ne.s32.totalorder %s2266_s14, %s2127_s20  ;;  %p2135_p12 = scmp.lt.s32.totalorder %s2266_s14, %s2266_s14 }
  0x23   : > { %p2136_p13 = scmp.lt.s32.totalorder %s2127_s20, %s2127_s20 }
  0x24   : > { %p2130_p10 = pnand %p2128_p9, %p2099_p7 }
  0x25   : > { %p2137_p2 = por %p2136_p13, %p2135_p12 }
  0x26   : > { %p2131_p11 = pneg %p2130_p10 }
  0x28   : > { %p2138_p3 = pnand %p2137_p2, %p2131_p11 }
  0x2a   : > { %2141 = shalt.err (!%p2138_p3)
}
  0x2b   : > { %s2160_s23 = smov [#allocation6]   ;;  %p2559_p0 = scmp.ne.s32.totalorder %s2557_s26, 0 }
  0x2c   : > { %2051 = dma.vmem_to_smem (!%p2262_p5), %s2266_s14, 16, %s2160_s23, [#allocation5]  }
  0x2d   : > { %401 = sbr.rel (%p2559_p0) target bundleno = 3443 (0xd73), region = 68  ;;  %p2560_p1 = scmp.eq.s32.totalorder (!%p2559_p0), %s2240_s22, 0 }
  0x32   : > { %2147 = dma.done.wait (%p2560_p1), [#allocation3], 16   ;;  %p2561_p7 = pmov %p2560_p1 }
  0x33   : > { %p2562_p4 = pmov %p2560_p1 }
  0x34   : > { %2149 = vsyncadd (%p2561_p7), [#allocation3], 4294967280 }
  0x35   : > { %2151 = dma.done.wait (%p2562_p4), [#allocation5], 144   ;;  %p2563_p6 = pmov %p2560_p1 }
  0x37   : > { %2153 = vsyncadd (%p2563_p6), [#allocation5], 4294967152 }
  0x38   : > { %415 = sfence }
  0x39   : > { %v469_v0 = vld [vmem:[%s2547_s5 + $0x10] sm:$0xf]  ;;  %vm481_vm0 = vcmask 1043456   ;;  %v2161_v1 = vmov 0.0   ;;  %v468_v2 = vld [vmem:[%s2547_s5 + $0x8] sm:$0xff]  ;;  %p454_p5 = scmp.lt.s32.totalorder %s2240_s22, 1 }
  0x3a   : > { %1925 = vmatprep.subr.mxu0 %v2161_v1  ;;  %1934 = vmatprep.subr.mxu1 %v2161_v1  ;;  %v616_v3 = vld [vmem:[%s2549_s7 + $0x18] sm:$0xff]  ;;  %vm2162_vm1 = vmmov 0   ;;  %v615_v4 = vld [vmem:[%s2549_s7 + $0x10] sm:$0xff]  ;;  %v467_v5 = vld [vmem:[%s2547_s5] sm:$0xff]  ;;  %vm477_vm2 = vcmask 162816   ;;  %vm617_vm3 = vcmask 261120  }
  0x3b   : > { %1926 = vmatpush3.msk.msra.mxu0 %vm481_vm0, %v469_v0  ;;  %1931 = vmatprep.mubr.msk.f32.mxu0 %vm2162_vm1, %v2161_v1  ;;  %s2322_s16 = scalar_select %p454_p5, %s2240_s22, 1  ;;  %v614_v7 = vld [vmem:[%s2549_s7 + $0x8] sm:$0xff]  ;;  %v613_v8 = vld [vmem:[%s2549_s7] sm:$0xff]  ;;  %vm694_vm4 = vcmask 130048   ;;  %vm772_vm5 = vcmask 64512   ;;  %vm1716_vm7 = vcmask 24576  }
  0x3c   : > { %1927 = vmatprep.subr.mxu0 %v2161_v1  ;;  %1935 = vmatpush3.msra.mxu1 %v616_v3  ;;  %v1835_v9 = vld [vmem:[%s2548_s6] ss:$0 sm:$0xff]  ;;  %s2163_s29 = smov 112   ;;  %s2164_s30 = smov 96   ;;  %vm1728_vm8 = vcmask 31744   ;;  %vm1730_vm9 = vcmask 32768  }
  0x3d   : > { %1928 = vmatpush3.msra.mxu0 %v468_v2  ;;  %1936 = vmatprep.subr.mxu1 %v2161_v1  ;;  %s1833_s17 = sshll.u32 %s2322_s16, 3  ;;  %s2165_s13 = smov 80  }
  0x3e   : > { %1929 = vmatprep.subr.mxu0 %v2161_v1  ;;  %1937 = vmatpush3.msra.mxu1 %v615_v4  ;;  %s457_s20 = scalar_lea.vmem %s2545_s3, %s1833_s17  ;;  %s561_s14 = sld [smem:[#allocation4]] }
  0x3f   : > { %1930 = vmatpush3.msra.mxu0 %v467_v5  ;;  %1938 = vmatprep.subr.mxu1 %v2161_v1  ;;  %v466_v6 = vld [vmem:[%s457_s20] sm:$0xff]  ;;  %s1838_s15 = sld [smem:[#allocation4 + $0x80]]  ;;  %s2029_s17 = smul.u32 48, %s2322_s16 }
  0x40   : > { %1942 = vmatprep.mubr.msk.f32.mxu1 %vm2162_vm1, %v2161_v1  ;;  %1945 = vmatprep.subr.mxu0 %v2161_v1  ;;  %s1839_s18 = sld [smem:[#allocation4 + $0x100]]  ;;  %s2167_s24 = smov 64  }
  0x41   : > { %1932 = vmatmul.mubr.msk.f32.vlgmr.msra.gmra.mxu0 %vm477_vm2, %v466_v6  ;;  %1939 = vmatpush3.msra.mxu1 %v614_v7  ;;  %s1843_s19 = sld [smem:[#allocation4 + $0x1]]  ;;  %s2376_s25 = scalar_lea.vmem %s2546_s4, %s2029_s17 }
  0x42   : > { %1947 = vmatprep.mubr.msk.f32.mxu0 %vm2162_vm1, %v2161_v1  ;;  %1940 = vmatprep.subr.mxu1 %v2161_v1  ;;  %s1844_s20 = sld [smem:[#allocation4 + $0x81]]  ;;  %v555_v18 = vld [vmem:[%s2376_s25] sm:$0xff]  ;;  %v556_v19 = vld [vmem:[%s2376_s25 + $0x8] sm:$0xff]  ;;  %v557_v24 = vld [vmem:[%s2376_s25 + $0x10] sm:$0xff] }
  0x43   : > { %1941 = vmatpush3.msra.mxu1 %v613_v8  ;;  %s1840_s26 = sld [smem:[#allocation4 + $0x180]]  ;;  %v558_v32 = vld [vmem:[%s2376_s25 + $0x18] sm:$0xff]  ;;  %v559_v39 = vld [vmem:[%s2376_s25 + $0x20] sm:$0xff]  ;;  %v560_v46 = vld [vmem:[%s2376_s25 + $0x28] sm:$0xff]  ;;  %s2168_s25 = smov 16  }
  0x44   : > { %1950 = vmatprep.subr.mxu1 %v2161_v1  ;;  %v562_v20 = vstv %s561_s14  ;;  %s1845_s27 = sld [smem:[#allocation4 + $0x101]] }
  0x45   : > { %v565_v21 = vstv %s1838_s15  ;;  %v563_v22 = vmul.f32 %v562_v20, %v555_v18  ;;  %s1841_s28 = sld [smem:[#allocation4 + $0x200]] }
  0x46   : > { %v566_v23 = vmul.f32 %v565_v21, %v556_v19  ;;  %v569_v25 = vstv %s1839_s18  ;;  %s1846_s17 = sld [smem:[#allocation4 + $0x181]] }
  0x47   : > { %v588_v26 = vstv %s1843_s19  ;;  %v570_v29 = vmul.f32 %v569_v25, %v557_v24  ;;  %s1842_s23 = sld [smem:[#allocation4 + $0x280]] }
  0x48   : > { %v591_v27 = vstv %s1844_s20  ;;  %v567_v28 = vadd.f32 %v566_v23, %v563_v22  ;;  %v589_v30 = vmul.f32 %v588_v26, %v555_v18  ;;  %s1847_s14 = sld [smem:[#allocation4 + $0x201]]  ;;  %s2166_s20 = smov 48  }
  0x49   : > { %v592_v31 = vmul.f32 %v591_v27, %v556_v19  ;;  %v573_v33 = vstv %s1840_s26  ;;  %s1848_s15 = sld [smem:[#allocation4 + $0x281]] }
  0x4a   : > { %v595_v34 = vstv %s1845_s27  ;;  %v571_v35 = vadd.f32 %v570_v29, %v567_v28  ;;  %v574_v36 = vmul.f32 %v573_v33, %v558_v32  ;;  %s584_s18 = sld [smem:[#allocation6]]  ;;  %v1035_v29 = vld [vmem:[%s2550_s8 + $0x10] sm:$0xff]  ;;  %s465_s27 = scalar_lea.vmem %s2554_s12, %s2322_s16 }
  0x4b   : > { %v593_v37 = vadd.f32 %v592_v31, %v589_v30  ;;  %v596_v38 = vmul.f32 %v595_v34, %v557_v24  ;;  %v577_v40 = vstv %s1841_s28  ;;  %s1849_s19 = sld [smem:[#allocation6 + $0x1]]  ;;  %v1034_v30 = vld [vmem:[%s2550_s8 + $0x8] sm:$0xff]  ;;  %v1033_v31 = vld [vmem:[%s2550_s8] sm:$0xff] }
  0x4c   : > { %v599_v41 = vstv %s1846_s17  ;;  %v575_v42 = vadd.f32 %v574_v36, %v571_v35  ;;  %v578_v43 = vmul.f32 %v577_v40, %v559_v39  ;;  %v1860_v40 = vld [vmem:[%s2549_s7 + $0x28] sm:$0xff] }
  0x4d   : > { %v597_v44 = vadd.f32 %v596_v38, %v593_v37  ;;  %v600_v45 = vmul.f32 %v599_v41, %v558_v32  ;;  %v581_v47 = vstv %s1842_s23  ;;  %v1862_v32 = vld [vmem:[%s2549_s7 + $0x38] sm:$0xff]  ;;  %v1859_v41 = vld [vmem:[%s2549_s7 + $0x20] sm:$0xff] }
  0x4e   : > { %v603_v48 = vstv %s1847_s14  ;;  %v579_v49 = vadd.f32 %v578_v43, %v575_v42  ;;  %v582_v50 = vmul.f32 %v581_v47, %v560_v46  ;;  %v1858_v43 = vld [vmem:[%s2551_s9] ss:$0 sm:$0xff] }
  0x4f   : > { %v601_v51 = vadd.f32 %v600_v45, %v597_v44  ;;  %v604_v52 = vmul.f32 %v603_v48, %v559_v39  ;;  %v607_v53 = vstv %s1848_s15  ;;  %v1861_v39 = vld [vmem:[%s2549_s7 + $0x30] sm:$0xff] }
  0x50   : > { %v583_v54 = vadd.f32 %v582_v50, %v579_v49  ;;  %v608_v56 = vmul.f32 %v607_v53, %v560_v46  ;;  %v585_v57 = vstv %s584_s18 }
  0x51   : > { %v605_v55 = vadd.f32 %v604_v52, %v601_v51  ;;  %v611_v61 = vstv %s1849_s19 }
  0x52   : > { %v2384_v58 = vadd.f32 %v585_v57, %v583_v54 }
  0x53   : > { %v609_v59 = vadd.f32 %v608_v56, %v605_v55 }
  0x55   : > { %v2389_v2 = vadd.f32 %v611_v61, %v609_v59 }
 0x101   : > { %v551_v10 = vpop.f32.mrf.mxu0 }
 0x102   : > { %v2347_v11 = vadd.f32 %v1835_v9, %v551_v10 }
 0x103   : > { %v1933_v12 = vpop.f32.mrf.mxu0 }
 0x104   : > { %1943 = vmatmul.mubr.msk.f32.vlgmr.msra.gmra.mxu1 %vm617_vm3, %v2347_v11 }
 0x105   : > { %1952 = vmatprep.mubr.msk.f32.mxu1 %vm2162_vm1, %v2161_v1 }
 0x1c4   : > { %v2353_v13 = vpop.f32.mrf.mxu1 }
 0x1c5   : > { %860 = vrot.lane.b32.xlu1 %v2353_v13, %s2163_s29  ;;  %692 = vrot.lane.b32.xlu0 %v2353_v13, %s2164_s30 }
 0x1c6   : > { %v1944_v14 = vpop.f32.mrf.mxu1 }
 0x1c9   : > { %862 = vrot.lane.b32.xlu0 %v2353_v13, %s2165_s13 }
 0x237   : > { %v693_v15 = vpop.permute.xlu0 %692  ;;  %v861_v17 = vpop.permute.xlu1 %860 }
 0x238   : > { %1946 = vmatpush3.xpose.msk.msra.mxu0 %vm694_vm4, %v693_v15 }
 0x239   : > { %1955 = vmatprep.subr.mxu0 %v2161_v1 }
 0x23b   : > { %1948 = vmatmul.mubr.msk.f32.vlgmr.msra.gmra.mxu0 %vm694_vm4, %v2353_v13  ;;  %v863_v16 = vpop.permute.xlu0 %862 }
 0x23c   : > { %1956 = vmatpush3.xpose.msk.msra.mxu0 %vm694_vm4, %v863_v16  ;;  %1957 = vmatprep.mubr.msk.f32.mxu0 %vm2162_vm1, %v2161_v1 }
 0x23d   : > { %1965 = vmatprep.subr.mxu0 %v2161_v1 }
 0x23f   : > { %1958 = vmatmul.mubr.msk.f32.vlgmr.msra.gmra.mxu0 %vm694_vm4, %v861_v17 }
 0x240   : > { %1973 = vmatprep.mubr.msk.f32.mxu0 %vm2162_vm1, %v2161_v1 }
 0x2fb   : > { %v765_v60 = vpop.f32.mrf.mxu0 }
 0x2fc   : > { %v769_v62 = vmul.f32 0.25, %v765_v60 }
 0x2fd   : > { %v1949_v63 = vpop.f32.mrf.mxu0 }
 0x2fe   : > { %v2387_v0 = vadd.f32 %v769_v62, %v2384_v58 }
 0x2ff   : > { %v934_v3 = vpop.f32.mrf.mxu0 }
 0x300   : > { %v938_v4 = vmul.f32 0.25, %v934_v3  ;;  %v773_v5 = vsel %vm772_vm5, %v2387_v0, -inf  ;;  %v771_v53 = vadd.f32 %v2387_v0, %v2384_v58 }
 0x301   : > { %774 = vmax.xlane.f32.xlu1 %v773_v5  ;;  %v1959_v6 = vpop.f32.mrf.mxu0 }
 0x302   : > { %v2394_v7 = vadd.f32 %v938_v4, %v2389_v2 }
 0x304   : > { %v941_v8 = vsel %vm772_vm5, %v2394_v7, -inf  ;;  %v940_v60 = vadd.f32 %v2394_v7, %v2389_v2 }
 0x305   : > { %942 = vmax.xlane.f32.xlu0 %v941_v8 }
 0x38a   : > { %v775_v9 = vpop.xlane.xlu1 %774 }
 0x38b   : > { %v776_v10 = vsub.f32 %v2387_v0, %v775_v9 }
 0x38d   : > { %v777_v12 = vmul.f32 1.442695, %v776_v10 }
 0x38e   : > { %v943_v14 = vpop.xlane.xlu0 %942 }
 0x38f   : > { %2077 = vpow2.f32 %v777_v12  ;;  %v944_v15 = vsub.f32 %v2394_v7, %v943_v14 }
 0x391   : > { %v945_v16 = vmul.f32 1.442695, %v944_v15 }
 0x393   : > { %2079 = vpow2.f32 %v945_v16 }
 0x39c   : > { %v2078_v17 = vpop.eup %2077 }
 0x39d   : > { %v779_v18 = vsel %vm772_vm5, %v2078_v17, 0.0 }
 0x39e   : > { %780 = vadd.xlane.f32.xlu0 %v779_v18 }
 0x3a0   : > { %v2080_v19 = vpop.eup %2079 }
 0x3a1   : > { %v947_v20 = vsel %vm772_vm5, %v2080_v19, 0.0 }
 0x3a2   : > { %948 = vadd.xlane.f32.xlu1 %v947_v20  ;;  %v1873_v20 = vld [vmem:[%s2550_s8 + $0x38] sm:$0xff] }
 0x3b3   : > { %952 = vrot.lane.b32.xlu1 %v2353_v13, %s2166_s20 }
 0x3b4   : > { %784 = vrot.lane.b32.xlu0 %v2353_v13, %s2167_s24  ;;  %v1036_v13 = vld [vmem:[%s2550_s8 + $0x18] sm:$0xff] }
 0x3b5   : > { %1966 = vmatpush3.msra.mxu0 %v1036_v13 }
 0x3b6   : > { %1967 = vmatprep.subr.mxu0 %v2161_v1 }
 0x3b7   : > { %1968 = vmatpush3.msra.mxu0 %v1035_v29  ;;  %v1641_v29 = vld [vmem:[%s2552_s10 + $0x18] sm:$0xff] }
 0x3b8   : > { %1969 = vmatprep.subr.mxu0 %v2161_v1 }
 0x3b9   : > { %1970 = vmatpush3.msra.mxu0 %v1034_v30  ;;  %v1640_v30 = vld [vmem:[%s2552_s10 + $0x10] sm:$0xff] }
 0x3ba   : > { %1971 = vmatprep.subr.mxu0 %v2161_v1 }
 0x3bb   : > { %1972 = vmatpush3.msra.mxu0 %v1033_v31  ;;  %v1639_v31 = vld [vmem:[%s2552_s10 + $0x8] sm:$0xff] }
 0x3bc   : > { %1987 = vmatprep.subr.mxu0 %v2161_v1 }
 0x427   : > { %v781_v21 = vpop.xlane.xlu0 %780 }
 0x428   : > { %2081 = vrcp.f32 %v781_v21  ;;  %v1872_v21 = vld [vmem:[%s2550_s8 + $0x30] sm:$0xff] }
 0x42b   : > { %v949_v22 = vpop.xlane.xlu1 %948  ;;  %v785_v23 = vpop.permute.xlu0 %784 }
 0x42c   : > { %2083 = vrcp.f32 %v949_v22  ;;  %1951 = vmatpush3.msra.mxu1 %v785_v23  ;;  %v1871_v22 = vld [vmem:[%s2550_s8 + $0x28] sm:$0xff]  ;;  %v1870_v23 = vld [vmem:[%s2550_s8 + $0x20] sm:$0xff] }
 0x42d   : > { %1960 = vmatprep.subr.mxu1 %v2161_v1 }
 0x42f   : > { %v953_v26 = vpop.permute.xlu1 %952 }
 0x435   : > { %v2082_v24 = vpop.eup %2081 }
 0x436   : > { %v783_v25 = vmul.f32 %v2082_v24, %v2078_v17 }
 0x438   : > { %1953 = vmatmul.mubr.msk.f32.vlgmr.msra.gmra.mxu1 %vm772_vm5, %v783_v25 }
 0x439   : > { %v2084_v27 = vpop.eup %2083  ;;  %1961 = vmatpush3.msra.mxu1 %v953_v26  ;;  %1962 = vmatprep.mubr.msk.f32.mxu1 %vm2162_vm1, %v2161_v1 }
 0x43a   : > { %v951_v28 = vmul.f32 %v2084_v27, %v2080_v19  ;;  %1976 = vmatprep.subr.mxu1 %v2161_v1 }
 0x43c   : > { %1963 = vmatmul.mubr.msk.f32.vlgmr.msra.gmra.mxu1 %vm772_vm5, %v951_v28 }
 0x43d   : > { %1984 = vmatprep.mubr.msk.f32.mxu1 %vm2162_vm1, %v2161_v1  ;;  %1977 = vmatpush3.msra.mxu1 %v1862_v32  ;;  %v1638_v32 = vld [vmem:[%s2552_s10] sm:$0xff] }
 0x43e   : > { %1978 = vmatprep.subr.mxu1 %v2161_v1 }
 0x43f   : > { %1979 = vmatpush3.msra.mxu1 %v1861_v39 }
 0x440   : > { %1980 = vmatprep.subr.mxu1 %v2161_v1 }
 0x441   : > { %1981 = vmatpush3.msra.mxu1 %v1860_v40 }
 0x442   : > { %1982 = vmatprep.subr.mxu1 %v2161_v1 }
 0x443   : > { %1983 = vmatpush3.msra.mxu1 %v1859_v41 }
 0x444   : > { %1992 = vmatprep.subr.mxu1 %v2161_v1 }
 0x4f8   : > { %v856_v33 = vpop.f32.mrf.mxu1 }
 0x4fa   : > { %v1954_v34 = vpop.f32.mrf.mxu1 }
 0x4fc   : > { %v1024_v35 = vpop.f32.mrf.mxu1 }
 0x4fd   : > { %1029 = vrot.lane.b32.xlu1 %v1024_v35, %s2168_s25 }
 0x4fe   : > { %v1964_v36 = vpop.f32.mrf.mxu1 }
 0x56f   : > { %v1030_v37 = vpop.permute.xlu1 %1029 }
 0x570   : > { %v1032_v38 = vsel %vm694_vm4, %v856_v33, %v1030_v37  ;;  %v1624_v33 = vlaneseq  ;;  %v1876_v37 = vld [vmem:[%s2551_s9 + $0x1] ss:$0 sm:$0xff] }
 0x571   : > { %1974 = vmatmul.mubr.msk.f32.vlgmr.msra.gmra.mxu0 %vm617_vm3, %v1032_v38 }
 0x572   : > { %1989 = vmatprep.mubr.msk.f32.mxu0 %vm2162_vm1, %v2161_v1  ;;  %v1625_v34 = vshrl.u32 %v1624_v33, 7 }
 0x631   : > { %v1106_v42 = vpop.f32.mrf.mxu0 }
 0x632   : > { %v1110_v44 = vadd.f32 %v1106_v42, %v2347_v11 }
 0x633   : > { %v1975_v45 = vpop.f32.mrf.mxu0 }
 0x634   : > { %v2455_v46 = vadd.f32 %v1858_v43, %v1110_v44 }
 0x636   : > { %1985 = vmatmul.mubr.msk.f32.vlgmr.msra.gmra.mxu1 %vm617_vm3, %v2455_v46 }
 0x637   : > { %1994 = vmatprep.mubr.msk.f32.mxu1 %vm2162_vm1, %v2161_v1 }
 0x6f6   : > { %v1193_v47 = vpop.f32.mrf.mxu1 }
 0x6f7   : > { %1365 = vrot.lane.b32.xlu1 %v1193_v47, %s2165_s13  ;;  %1198 = vrot.lane.b32.xlu0 %v1193_v47, %s2164_s30  ;;  %s1623_s30 = sld [smem:[#allocation2 + %s2240_s22]] }
 0x6f8   : > { %v1986_v48 = vpop.f32.mrf.mxu1 }
 0x6fb   : > { %1363 = vrot.lane.b32.xlu0 %v1193_v47, %s2163_s29 }
 0x6fd   : > { %v1626_v35 = vstv %s1623_s30 }
 0x6fe   : > { %vm1627_vm6 = vcmp.eq.s32.totalorder %v1625_v34, %v1626_v35 }
 0x769   : > { %v1199_v49 = vpop.permute.xlu0 %1198  ;;  %v1366_v11 = vpop.permute.xlu1 %1365 }
 0x76a   : > { %1988 = vmatpush3.xpose.msk.msra.mxu0 %vm694_vm4, %v1199_v49  ;;  %v1642_v49 = vld [vmem:[%s2553_s11] sm:$0x1] }
 0x76b   : > { %1997 = vmatprep.subr.mxu0 %v2161_v1 }
 0x76d   : > { %1990 = vmatmul.mubr.msk.f32.vlgmr.msra.gmra.mxu0 %vm694_vm4, %v1193_v47  ;;  %v1364_v50 = vpop.permute.xlu0 %1363 }
 0x76e   : > { %1998 = vmatpush3.xpose.msk.msra.mxu0 %vm694_vm4, %v1366_v11  ;;  %1999 = vmatprep.mubr.msk.f32.mxu0 %vm2162_vm1, %v2161_v1 }
 0x76f   : > { %2007 = vmatprep.subr.mxu0 %v2161_v1 }
 0x771   : > { %2000 = vmatmul.mubr.msk.f32.vlgmr.msra.gmra.mxu0 %vm694_vm4, %v1364_v50 }
 0x772   : > { %2015 = vmatprep.mubr.msk.f32.mxu0 %vm2162_vm1, %v2161_v1  ;;  %2008 = vmatpush3.msra.mxu0 %v1873_v20 }
 0x773   : > { %2009 = vmatprep.subr.mxu0 %v2161_v1 }
 0x774   : > { %2010 = vmatpush3.msra.mxu0 %v1872_v21 }
 0x775   : > { %2011 = vmatprep.subr.mxu0 %v2161_v1 }
 0x776   : > { %2012 = vmatpush3.msra.mxu0 %v1871_v22 }
 0x777   : > { %2013 = vmatprep.subr.mxu0 %v2161_v1 }
 0x778   : > { %2014 = vmatpush3.msra.mxu0 %v1870_v23 }
 0x82d   : > { %v1270_v51 = vpop.f32.mrf.mxu0 }
 0x82e   : > { %v1274_v52 = vmul.f32 0.25, %v1270_v51 }
 0x82f   : > { %v1991_v54 = vpop.f32.mrf.mxu0 }
 0x830   : > { %v1275_v55 = vadd.f32 %v1274_v52, %v771_v53 }
 0x831   : > { %v1437_v56 = vpop.f32.mrf.mxu0 }
 0x832   : > { %v1441_v57 = vmul.f32 0.25, %v1437_v56  ;;  %v1276_v59 = vsel %vm772_vm5, %v1275_v55, -inf }
 0x833   : > { %1277 = vmax.xlane.f32.xlu1 %v1276_v59  ;;  %v2001_v61 = vpop.f32.mrf.mxu0 }
 0x834   : > { %v1442_v62 = vadd.f32 %v1441_v57, %v940_v60 }
 0x836   : > { %v1443_v63 = vsel %vm772_vm5, %v1442_v62, -inf }
 0x837   : > { %1444 = vmax.xlane.f32.xlu0 %v1443_v63 }
 0x8bc   : > { %v1278_v3 = vpop.xlane.xlu1 %1277 }
 0x8bd   : > { %v1279_v4 = vsub.f32 %v1275_v55, %v1278_v3 }
 0x8bf   : > { %v1280_v5 = vmul.f32 1.442695, %v1279_v4 }
 0x8c0   : > { %v1445_v6 = vpop.xlane.xlu0 %1444 }
 0x8c1   : > { %2085 = vpow2.f32 %v1280_v5  ;;  %v1446_v58 = vsub.f32 %v1442_v62, %v1445_v6 }
 0x8c3   : > { %v1447_v0 = vmul.f32 1.442695, %v1446_v58 }
 0x8c5   : > { %2087 = vpow2.f32 %v1447_v0 }
 0x8ce   : > { %v2086_v8 = vpop.eup %2085 }
 0x8cf   : > { %v1282_v9 = vsel %vm772_vm5, %v2086_v8, 0.0 }
 0x8d0   : > { %1283 = vadd.xlane.f32.xlu0 %v1282_v9 }
 0x8d2   : > { %v2088_v10 = vpop.eup %2087 }
 0x8d3   : > { %v1449_v2 = vsel %vm772_vm5, %v2088_v10, 0.0 }
 0x8d4   : > { %1450 = vadd.xlane.f32.xlu1 %v1449_v2 }
 0x8e5   : > { %1454 = vrot.lane.b32.xlu1 %v1193_v47, %s2166_s20 }
 0x8e6   : > { %1287 = vrot.lane.b32.xlu0 %v1193_v47, %s2167_s24 }
 0x959   : > { %v1284_v7 = vpop.xlane.xlu0 %1283 }
 0x95a   : > { %2089 = vrcp.f32 %v1284_v7 }
 0x95d   : > { %v1451_v12 = vpop.xlane.xlu1 %1450  ;;  %v1288_v14 = vpop.permute.xlu0 %1287 }
 0x95e   : > { %2091 = vrcp.f32 %v1451_v12  ;;  %1993 = vmatpush3.msra.mxu1 %v1288_v14 }
 0x95f   : > { %2002 = vmatprep.subr.mxu1 %v2161_v1 }
 0x961   : > { %v1455_v17 = vpop.permute.xlu1 %1454 }
 0x967   : > { %v2090_v15 = vpop.eup %2089 }
 0x968   : > { %v1286_v16 = vmul.f32 %v2090_v15, %v2086_v8 }
 0x96a   : > { %1995 = vmatmul.mubr.msk.f32.vlgmr.msra.gmra.mxu1 %vm772_vm5, %v1286_v16 }
 0x96b   : > { %v2092_v18 = vpop.eup %2091  ;;  %2003 = vmatpush3.msra.mxu1 %v1455_v17  ;;  %2004 = vmatprep.mubr.msk.f32.mxu1 %vm2162_vm1, %v2161_v1 }
 0x96c   : > { %v1453_v19 = vmul.f32 %v2092_v18, %v2088_v10  ;;  %2018 = vmatprep.subr.mxu1 %v2161_v1 }
 0x96e   : > { %2005 = vmatmul.mubr.msk.f32.vlgmr.msra.gmra.mxu1 %vm772_vm5, %v1453_v19 }
 0x96f   : > { %2026 = vmatprep.mubr.msk.f32.mxu1 %vm2162_vm1, %v2161_v1  ;;  %2019 = vmatpush3.msra.mxu1 %v1641_v29 }
 0x970   : > { %2020 = vmatprep.subr.mxu1 %v2161_v1 }
 0x971   : > { %2021 = vmatpush3.msra.mxu1 %v1640_v30 }
 0x972   : > { %2022 = vmatprep.subr.mxu1 %v2161_v1 }
 0x973   : > { %2023 = vmatpush3.msra.mxu1 %v1639_v31 }
 0x974   : > { %2024 = vmatprep.subr.mxu1 %v2161_v1 }
 0x975   : > { %2025 = vmatpush3.msra.mxu1 %v1638_v32 }
 0xa2a   : > { %v1359_v24 = vpop.f32.mrf.mxu1 }
 0xa2c   : > { %v1996_v25 = vpop.f32.mrf.mxu1 }
 0xa2e   : > { %v1526_v26 = vpop.f32.mrf.mxu1 }
 0xa2f   : > { %1531 = vrot.lane.b32.xlu1 %v1526_v26, %s2168_s25 }
 0xa30   : > { %v2006_v27 = vpop.f32.mrf.mxu1 }
 0xaa1   : > { %v1532_v28 = vpop.permute.xlu1 %1531 }
 0xaa2   : > { %v1534_v13 = vsel %vm694_vm4, %v1359_v24, %v1532_v28 }
 0xaa3   : > { %2016 = vmatmul.mubr.msk.f32.vlgmr.msra.gmra.mxu0 %vm617_vm3, %v1534_v13 }
 0xb63   : > { %v1609_v36 = vpop.f32.mrf.mxu0 }
 0xb64   : > { %v1613_v38 = vadd.f32 %v1609_v36, %v2455_v46 }
 0xb65   : > { %v2017_v39 = vpop.f32.mrf.mxu0 }
 0xb66   : > { %v1622_v40 = vadd.f32 %v1876_v37, %v1613_v38 }
 0xb68   : > { %v1630_v41 = vsel %vm1627_vm6, %v1622_v40, 0.0 }
 0xb69   : > { %v1631_v42 = vsel %vm617_vm3, %v1630_v41, 0.0 }
 0xb6a   : > { %v1632_v43 = vrot.slane %v1631_v42, 4 }
 0xb6c   : > { %v1633_v1 = vadd.f32 %v1632_v43, %v1631_v42 }
 0xb6e   : > { %v1634_v44 = vrot.slane %v1633_v1, 2 }
 0xb70   : > { %v1635_v45 = vadd.f32 %v1634_v44, %v1633_v1 }
 0xb72   : > { %v1636_v47 = vrot.slane %v1635_v45, 1 }
 0xb74   : > { %v1637_v48 = vadd.f32 %v1636_v47, %v1635_v45 }
 0xb76   : > { %2027 = vmatmul.mubr.msk.f32.vlgmr.msra.gmra.mxu1 %vm617_vm3, %v1637_v48 }
 0xc36   : > { %v1712_v11 = vpop.f32.mrf.mxu1 }
 0xc37   : > { %v1713_v46 = vadd.f32 %v1712_v11, %v1642_v49 }
 0xc38   : > { %v2028_v50 = vpop.f32.mrf.mxu1 }
 0xc39   : > { %v1717_v51 = vsel %vm1716_vm7, %v1713_v46, -inf }
 0xc3a   : > { %1718 = vmax.xlane.f32.xlu0 %v1717_v51 }
 0xcc3   : > { %v1719_v52 = vpop.xlane.xlu0 %1718 }
 0xcc4   : > { %v1720_v53 = vsub.f32 %v1713_v46, %v1719_v52 }
 0xcc6   : > { %v1721_v54 = vmul.f32 1.442695, %v1720_v53 }
 0xcc8   : > { %2093 = vpow2.f32 %v1721_v54 }
 0xcd5   : > { %v2094_v55 = vpop.eup %2093 }
 0xcd6   : > { %v1723_v56 = vsel %vm1716_vm7, %v2094_v55, 0.0 }
 0xcd7   : > { %1724 = vadd.xlane.f32.xlu1 %v1723_v56 }
 0xd60   : > { %v1725_v57 = vpop.xlane.xlu1 %1724 }
 0xd61   : > { %2095 = vrcp.f32 %v1725_v57 }
 0xd6e   : > { %v2096_v59 = vpop.eup %2095 }
 0xd6f   : > { %v1727_v60 = vmul.f32 %v2096_v59, %v2094_v55 }
 0xd71   : > { %v1729_v61 = vsel %vm1728_vm8, %v1727_v60, %v1713_v46 }
 0xd72   : > { %1731 = vst.msk [vmem:[%s465_s27] sm:$0x1] %vm1730_vm9, %v1729_v61 }
 0xd73 PF: > { %s24_s21 = sadd.s32 1, %s2156_s21  }
 0xd74   : > { %p21_p8 = scmp.ge.s32.totalorder %s24_s21, 4  }
 0xd76   :  { %23 = sbr.rel (!%p21_p8) target bundleno = 2 (0x2), region = 117 }
 0xd7b   :  { %1749 = vsyncpa [#allocation3], 1 }
 0xd7c   :  { %1751 = vsyncpa [#allocation3 + $0x1], 1 }
 0xd7d   :  { %1752 = vsyncpa [#allocation5], 1 }

</bundles_post_ra>
